<compile_context>
chip_gen: v7x
topology: tpu7x:2x2x1
jax: 0.10.0
libtpu: 0.0.40
codegen_flags: <defaults>
</compile_context>

<pallas_src>
import jax
import jax.numpy as jnp
from jax.experimental import pallas as pl
from jax.experimental.pallas import tpu as pltpu

BN_EPS = 1e-5
KSIZE = 7
CIN = 3
COUT = 64
K_RAW = KSIZE * KSIZE * CIN          # 147
K_PAD = 160                          # contraction dim padded to a multiple of 8/16


# ---------------------------------------------------------------------------
# Pass 1: tiled GEMM (bf16 MXU, f32 acc) + per-tile BN partial statistics
# ---------------------------------------------------------------------------
def gemm_stats_kernel(p_ref, w_ref, conv_ref, stats_ref):
    # p_ref:    (TM, Kp) bf16 im2col rows         w_ref: (Kp, C) bf16 weights
    # conv_ref: (TM, C)  bf16 conv output tile    stats_ref: (1, 2, C) f32 partials
    y = jnp.dot(p_ref[...], w_ref[...], preferred_element_type=jnp.float32)
    conv_ref[...] = y.astype(jnp.bfloat16)
    s = jnp.sum(y, axis=0, keepdims=True)          # (1, C)
    ss = jnp.sum(y * y, axis=0, keepdims=True)     # (1, C)
    stats_ref[0] = jnp.concatenate([s, ss], axis=0)


def conv_gemm_stats(patches_bf16, w_bf16, tm):
    m, kp = patches_bf16.shape
    c = w_bf16.shape[1]
    g = m // tm
    return pl.pallas_call(
        gemm_stats_kernel,
        out_shape=(jax.ShapeDtypeStruct((m, c), jnp.bfloat16),
                   jax.ShapeDtypeStruct((g, 2, c), jnp.float32)),
        grid=(g,),
        in_specs=[pl.BlockSpec((tm, kp), lambda i: (i, 0)),
                  pl.BlockSpec((kp, c), lambda i: (0, 0))],
        out_specs=(pl.BlockSpec((tm, c), lambda i: (i, 0)),
                   pl.BlockSpec((1, 2, c), lambda i: (i, 0, 0))),
        compiler_params=pltpu.CompilerParams(
            dimension_semantics=("parallel",)),
    )(patches_bf16, w_bf16)


# ---------------------------------------------------------------------------
# Pass 2: BN affine + ReLU + fused 3x3/s2 max-pool (parity decomposition)
# ---------------------------------------------------------------------------
def bn_relu_pool_kernel(ee_ref, eo_ref, oe_ref, oo_ref, scale_ref, shift_ref, o_ref):
    scale = scale_ref[...]          # (1, C) f32
    shift = shift_ref[...]

    def act(r):                      # BN affine + ReLU in f32
        return jnp.maximum(r[...].astype(jnp.float32) * scale + shift, 0.0)

    # Parity planes of the conv output: ee = (row 2p, col 2q), eo = (2p, 2q+1),
    # oe = (2p+1, 2q), oo = (2p+1, 2q+1); each is (Hp, Wp, C).
    ee = act(ee_ref)
    eo = act(eo_ref)
    oe = act(oe_ref)
    oo = act(oo_ref)

    # Post-ReLU values are >= 0, so 0 is a safe padding identity for the max-pool
    # boundary (every 3x3 window contains at least one real element).
    def shift_down(x):               # x[p-1, q]
        pad = jnp.zeros((1,) + x.shape[1:], x.dtype)
        return jnp.concatenate([pad, x[:-1]], axis=0)

    def shift_right(x):              # x[p, q-1]
        pad = jnp.zeros((x.shape[0], 1, x.shape[2]), x.dtype)
        return jnp.concatenate([pad, x[:, :-1, :]], axis=1)

    cc = jnp.maximum(jnp.maximum(ee, oe), shift_down(oe))   # window col 2q
    cp = jnp.maximum(jnp.maximum(eo, oo), shift_down(oo))   # window col 2q+1
    o_ref[...] = jnp.maximum(jnp.maximum(cc, cp), shift_right(cp))


def bn_relu_maxpool(conv5, scale, shift, n, hp, wp, c):
    # conv5: (N*2, Hp, 2, Wp, C) bf16 -- rows ordered (n, h_parity, hp, w_parity, wp)
    def par_spec(hpar, wpar):
        return pl.BlockSpec(
            (None, hp, None, wp, c),
            lambda i, hpar=hpar, wpar=wpar: (2 * i + hpar, 0, wpar, 0, 0))

    return pl.pallas_call(
        bn_relu_pool_kernel,
        out_shape=jax.ShapeDtypeStruct((n, hp, wp, c), jnp.float32),
        grid=(n,),
        in_specs=[par_spec(0, 0), par_spec(0, 1), par_spec(1, 0), par_spec(1, 1),
                  pl.BlockSpec((1, c), lambda i: (0, 0)),
                  pl.BlockSpec((1, c), lambda i: (0, 0))],
        out_specs=pl.BlockSpec((None, hp, wp, c), lambda i: (i, 0, 0, 0)),
        compiler_params=pltpu.CompilerParams(
            dimension_semantics=("parallel",)),
    )(conv5, conv5, conv5, conv5, scale, shift)


# ---------------------------------------------------------------------------
# XLA glue
# ---------------------------------------------------------------------------
def pick_tile(m, cap=2048):
    for t in (2048, 1024, 512, 256, 128, 64, 32, 16, 8):
        if t <= cap and m % t == 0:
            return t
    return m                         # fall back to a single tile (still small here)


def im2col_parity(x_nhwc, ksize=KSIZE, pad=3):
    """im2col for 7x7/s2/p3 conv with rows ordered (n, h_parity, hp, w_parity, wp)."""
    n, h, w, cin = x_nhwc.shape
    assert h % 4 == 0 and w % 4 == 0, "spatial dims must be multiples of 4"
    # TODO(synk): support odd conv-output sizes (parity split assumes Ho, Wo even).
    hp, wp = h // 4, w // 4
    xp = jnp.pad(x_nhwc, ((0, 0), (pad, pad), (pad, pad), (0, 0)))
    cols = []
    for kh in range(ksize):
        for kw in range(ksize):
            hs = []
            for hpar in range(2):
                ws = []
                for wpar in range(2):
                    r0 = 2 * hpar + kh
                    c0 = 2 * wpar + kw
                    ws.append(xp[:, r0:r0 + 4 * hp:4, c0:c0 + 4 * wp:4, :])
                hs.append(jnp.stack(ws, axis=2))       # (n, hp, 2, wp, cin)
            cols.append(jnp.stack(hs, axis=1))         # (n, 2, hp, 2, wp, cin)
    patches = jnp.stack(cols, axis=5)                  # (n, 2, hp, 2, wp, 49, cin)
    patches = patches.reshape(n * 2 * hp * 2 * wp, ksize * ksize * cin)
    return patches, hp, wp


def resnet_top_forward(x_nchw, params):
    """x_nchw: (N, 3, H, W) float32 -> (N, 64, H//4, W//4) float32."""
    w_hwio, conv_bias, gamma, beta = params
    del conv_bias   # cancels exactly under training-mode BatchNorm (mean subtraction)
    n, cin, h, w = x_nchw.shape
    cout = w_hwio.shape[-1]

    # NCHW -> NHWC, bf16 GEMM inputs (f32 MXU accumulator inside the kernel).
    x_nhwc = jnp.transpose(x_nchw, (0, 2, 3, 1)).astype(jnp.bfloat16)
    patches, hp, wp = im2col_parity(x_nhwc)
    patches = jnp.pad(patches, ((0, 0), (0, K_PAD - patches.shape[1])))
    w_mat = jnp.pad(w_hwio.reshape(-1, cout),
                    ((0, K_PAD - KSIZE * KSIZE * cin), (0, 0))).astype(jnp.bfloat16)

    m = patches.shape[0]
    tm = pick_tile(m)
    conv_out, stats = conv_gemm_stats(patches, w_mat, tm)   # (M,C) bf16, (G,2,C) f32

    # Global BN statistics (training mode: batch mean, biased variance) -> scale/shift.
    m_f = jnp.float32(m)
    tot = jnp.sum(stats, axis=0)                            # (2, C)
    mean = tot[0] / m_f
    var = jnp.maximum(tot[1] / m_f - mean * mean, 0.0)
    inv = jax.lax.rsqrt(var + BN_EPS)
    scale = (gamma * inv).reshape(1, cout).astype(jnp.float32)
    shift = (beta - mean * gamma * inv).reshape(1, cout).astype(jnp.float32)

    # Fused BN + ReLU + 3x3/s2 max-pool; conv_out is read exactly once.
    conv5 = conv_out.reshape(n * 2, hp, 2, wp, cout)
    pooled = bn_relu_maxpool(conv5, scale, shift, n, hp, wp, cout)  # (N,Hp,Wp,C) f32
    return jnp.transpose(pooled, (0, 3, 1, 2))              # NHWC -> NCHW


def init_params(key, cin=CIN, cout=COUT, ksize=KSIZE):
    k_w, k_b = jax.random.split(key)
    w_hwio = jax.random.normal(k_w, (ksize, ksize, cin, cout), jnp.float32) * 0.05
    conv_bias = jax.random.normal(k_b, (cout,), jnp.float32) * 0.01
    gamma = jnp.ones((cout,), jnp.float32)
    beta = jnp.zeros((cout,), jnp.float32)
    return (w_hwio, conv_bias, gamma, beta)


def reference_forward(x_nchw, params):
    """Pure-XLA reference (f32) for a loose numerical sanity check."""
    w_hwio, conv_bias, gamma, beta = params
    x = jnp.transpose(x_nchw, (0, 2, 3, 1))
    y = jax.lax.conv_general_dilated(
        x, w_hwio, window_strides=(2, 2), padding=((3, 3), (3, 3)),
        dimension_numbers=("NHWC", "HWIO", "NHWC"),
        precision=jax.lax.Precision.HIGHEST)
    y = y + conv_bias
    mean = y.mean(axis=(0, 1, 2))
    var = ((y - mean) ** 2).mean(axis=(0, 1, 2))
    y = (y - mean) * jax.lax.rsqrt(var + BN_EPS) * gamma + beta
    y = jnp.maximum(y, 0.0)
    yp = jnp.pad(y, ((0, 0), (1, 1), (1, 1), (0, 0)), constant_values=-jnp.inf)
    pooled = jax.lax.reduce_window(yp, -jnp.inf, jax.lax.max,
                                   (1, 3, 3, 1), (1, 2, 2, 1), "VALID")
    return jnp.transpose(pooled, (0, 3, 1, 2))


if __name__ == "__main__":
    key = jax.random.PRNGKey(0)
    k_x, k_p = jax.random.split(key)

    x = jax.random.normal(k_x, (2, 3, 16, 16), jnp.float32)   # NCHW, 3 input channels
    params = init_params(k_p)

    out = jax.block_until_ready(jax.jit(resnet_top_forward)(x, params))

    assert out.shape == (2, 64, 4, 4), out.shape
    assert out.dtype == jnp.float32
    assert bool(jnp.all(jnp.isfinite(out)))
    assert bool(jnp.all(out >= 0.0))            # ReLU then max-pool => non-negative

    ref = jax.block_until_ready(jax.jit(reference_forward)(x, params))
    max_err = float(jnp.max(jnp.abs(out - ref)))
    assert max_err < 0.2, f"max abs err vs reference too large: {max_err}"

    print("KERNEL_OK")
</pallas_src>

<mosaic_0001>
module attributes {stable_mosaic.version = 11 : i64} {
  func.func @gemm_stats_kernel(%arg0: i32, %arg1: memref<128x160xbf16, #tpu.memory_space<vmem>>, %arg2: memref<160x64xbf16, #tpu.memory_space<vmem>>, %arg3: memref<128x64xbf16, #tpu.memory_space<vmem>>, %arg4: memref<1x2x64xf32, #tpu.memory_space<vmem>>) attributes {dimension_semantics = [#tpu.dimension_semantics<parallel>], iteration_bounds = array<i64: 1>, scalar_prefetch = 0 : i64, scratch_operands = 0 : i64, tpu.core_type = #tpu.core_type<tc>, window_params = [{transform_indices = @transform_0, window_bounds = array<i64: 128, 160>}, {pipeline_mode = #tpu.pipeline_mode<synchronous>, transform_indices = @transform_1, window_bounds = array<i64: 160, 64>}, {transform_indices = @transform_2, window_bounds = array<i64: 128, 64>}, {transform_indices = @transform_3, window_bounds = array<i64: 1, 2, 64>}]} {
    %c0 = arith.constant 0 : index
    %c0_0 = arith.constant 0 : index
    %0 = vector.load %arg1[%c0, %c0_0] : memref<128x160xbf16, #tpu.memory_space<vmem>>, vector<128x160xbf16>
    %c0_1 = arith.constant 0 : index
    %c0_2 = arith.constant 0 : index
    %1 = vector.load %arg2[%c0_1, %c0_2] : memref<160x64xbf16, #tpu.memory_space<vmem>>, vector<160x64xbf16>
    %cst = arith.constant dense<0.000000e+00> : vector<128x64xf32>
    %2 = tpu.matmul %0, %1, %cst {dimension_numbers = #tpu.dot_dimension_numbers<[1], [0], [0], [1], [0, 0, 1, 1], [], []>} : vector<128x160xbf16>, vector<160x64xbf16>, vector<128x64xf32> -> vector<128x64xf32>
    %3 = arith.truncf %2 : vector<128x64xf32> to vector<128x64xbf16>
    %c0_3 = arith.constant 0 : index
    %c0_4 = arith.constant 0 : index
    %4 = vector.load %arg3[%c0_3, %c0_4] : memref<128x64xbf16, #tpu.memory_space<vmem>>, vector<128x64xbf16>
    tpu.vector_store %arg3[%c0_3, %c0_4], %3 {strides = array<i32>} : memref<128x64xbf16, #tpu.memory_space<vmem>>, vector<128x64xbf16>,
    %cst_5 = arith.constant dense<0.000000e+00> : vector<64xf32>
    %5 = vector.multi_reduction <add>, %2, %cst_5 [0] : vector<128x64xf32> to vector<64xf32>
    %6 = vector.shape_cast %5 : vector<64xf32> to vector<1x64xf32>
    %7 = arith.mulf %2, %2 : vector<128x64xf32>
    %cst_6 = arith.constant dense<0.000000e+00> : vector<64xf32>
    %8 = vector.multi_reduction <add>, %7, %cst_6 [0] : vector<128x64xf32> to vector<64xf32>
    %9 = vector.shape_cast %8 : vector<64xf32> to vector<1x64xf32>
    %10 = tpu.concatenate %6, %9 in 0 : vector<1x64xf32>, vector<1x64xf32> -> vector<2x64xf32>
    %c0_7 = arith.constant 0 : index
    %c0_8 = arith.constant 0 : index
    %c0_9 = arith.constant 0 : index
    %11 = vector.load %arg4[%c0_7, %c0_8, %c0_9] : memref<1x2x64xf32, #tpu.memory_space<vmem>>, vector<1x2x64xf32>
    %12 = vector.shape_cast %11 : vector<1x2x64xf32> to vector<2x64xf32>
    %13 = vector.shape_cast %10 : vector<2x64xf32> to vector<1x2x64xf32>
    tpu.vector_store %arg4[%c0_7, %c0_8, %c0_9], %13 {strides = array<i32>} : memref<1x2x64xf32, #tpu.memory_space<vmem>>, vector<1x2x64xf32>,
    return
  }
  func.func @transform_0(%arg0: i32) -> (i32, i32) {
    %c0_i32 = arith.constant 0 : i32
    %c0_i32_0 = arith.constant 0 : i32
    return %arg0, %c0_i32 : i32, i32
  }
  func.func @transform_1(%arg0: i32) -> (i32, i32) {
    %c0_i32 = arith.constant 0 : i32
    %c0_i32_0 = arith.constant 0 : i32
    %c0_i32_1 = arith.constant 0 : i32
    return %c0_i32, %c0_i32_0 : i32, i32
  }
  func.func @transform_2(%arg0: i32) -> (i32, i32) {
    %c0_i32 = arith.constant 0 : i32
    %c0_i32_0 = arith.constant 0 : i32
    return %arg0, %c0_i32 : i32, i32
  }
  func.func @transform_3(%arg0: i32) -> (i32, i32, i32) {
    %c0_i32 = arith.constant 0 : i32
    %c0_i32_0 = arith.constant 0 : i32
    %c0_i32_1 = arith.constant 0 : i32
    return %arg0, %c0_i32, %c0_i32_0 : i32, i32, i32
  }
}

module attributes {stable_mosaic.version = 11 : i64} {
  func.func @bn_relu_pool_kernel(%arg0: i32, %arg1: memref<1x4x1x4x64xbf16, #tpu.memory_space<vmem>>, %arg2: memref<1x4x1x4x64xbf16, #tpu.memory_space<vmem>>, %arg3: memref<1x4x1x4x64xbf16, #tpu.memory_space<vmem>>, %arg4: memref<1x4x1x4x64xbf16, #tpu.memory_space<vmem>>, %arg5: memref<1x64xf32, #tpu.memory_space<vmem>>, %arg6: memref<1x64xf32, #tpu.memory_space<vmem>>, %arg7: memref<1x4x4x64xf32, #tpu.memory_space<vmem>>) attributes {dimension_semantics = [#tpu.dimension_semantics<parallel>], iteration_bounds = array<i64: 2>, scalar_prefetch = 0 : i64, scratch_operands = 0 : i64, tpu.core_type = #tpu.core_type<tc>, window_params = [{transform_indices = @transform_0, window_bounds = array<i64: 1, 4, 1, 4, 64>}, {transform_indices = @transform_1, window_bounds = array<i64: 1, 4, 1, 4, 64>}, {transform_indices = @transform_2, window_bounds = array<i64: 1, 4, 1, 4, 64>}, {transform_indices = @transform_3, window_bounds = array<i64: 1, 4, 1, 4, 64>}, {pipeline_mode = #tpu.pipeline_mode<synchronous>, transform_indices = @transform_4, window_bounds = array<i64: 1, 64>}, {pipeline_mode = #tpu.pipeline_mode<synchronous>, transform_indices = @transform_5, window_bounds = array<i64: 1, 64>}, {transform_indices = @transform_6, window_bounds = array<i64: 1, 4, 4, 64>}]} {
    %c0 = arith.constant 0 : index
    %c0_0 = arith.constant 0 : index
    %0 = vector.load %arg5[%c0, %c0_0] : memref<1x64xf32, #tpu.memory_space<vmem>>, vector<1x64xf32>
    %c0_1 = arith.constant 0 : index
    %c0_2 = arith.constant 0 : index
    %1 = vector.load %arg6[%c0_1, %c0_2] : memref<1x64xf32, #tpu.memory_space<vmem>>, vector<1x64xf32>
    %c0_3 = arith.constant 0 : index
    %c0_4 = arith.constant 0 : index
    %c0_5 = arith.constant 0 : index
    %c0_6 = arith.constant 0 : index
    %c0_7 = arith.constant 0 : index
    %2 = vector.load %arg1[%c0_3, %c0_4, %c0_5, %c0_6, %c0_7] : memref<1x4x1x4x64xbf16, #tpu.memory_space<vmem>>, vector<1x4x1x4x64xbf16>
    %3 = vector.shape_cast %2 : vector<1x4x1x4x64xbf16> to vector<4x4x64xbf16>
    %4 = arith.extf %3 : vector<4x4x64xbf16> to vector<4x4x64xf32>
    %5 = vector.shape_cast %0 : vector<1x64xf32> to vector<1x1x64xf32>
    %6 = vector.broadcast %5 : vector<1x1x64xf32> to vector<4x4x64xf32>
    %7 = arith.mulf %4, %6 : vector<4x4x64xf32>
    %8 = vector.shape_cast %1 : vector<1x64xf32> to vector<1x1x64xf32>
    %9 = vector.broadcast %8 : vector<1x1x64xf32> to vector<4x4x64xf32>
    %10 = arith.addf %7, %9 : vector<4x4x64xf32>
    %cst = arith.constant 0.000000e+00 : f32
    %11 = vector.broadcast %cst : f32 to vector<4x4x64xf32>
    %12 = arith.maximumf %10, %11 : vector<4x4x64xf32>
    %c0_8 = arith.constant 0 : index
    %c0_9 = arith.constant 0 : index
    %c0_10 = arith.constant 0 : index
    %c0_11 = arith.constant 0 : index
    %c0_12 = arith.constant 0 : index
    %13 = vector.load %arg2[%c0_8, %c0_9, %c0_10, %c0_11, %c0_12] : memref<1x4x1x4x64xbf16, #tpu.memory_space<vmem>>, vector<1x4x1x4x64xbf16>
    %14 = vector.shape_cast %13 : vector<1x4x1x4x64xbf16> to vector<4x4x64xbf16>
    %15 = arith.extf %14 : vector<4x4x64xbf16> to vector<4x4x64xf32>
    %16 = vector.shape_cast %0 : vector<1x64xf32> to vector<1x1x64xf32>
    %17 = vector.broadcast %16 : vector<1x1x64xf32> to vector<4x4x64xf32>
    %18 = arith.mulf %15, %17 : vector<4x4x64xf32>
    %19 = vector.shape_cast %1 : vector<1x64xf32> to vector<1x1x64xf32>
    %20 = vector.broadcast %19 : vector<1x1x64xf32> to vector<4x4x64xf32>
    %21 = arith.addf %18, %20 : vector<4x4x64xf32>
    %cst_13 = arith.constant 0.000000e+00 : f32
    %22 = vector.broadcast %cst_13 : f32 to vector<4x4x64xf32>
    %23 = arith.maximumf %21, %22 : vector<4x4x64xf32>
    %c0_14 = arith.constant 0 : index
    %c0_15 = arith.constant 0 : index
    %c0_16 = arith.constant 0 : index
    %c0_17 = arith.constant 0 : index
    %c0_18 = arith.constant 0 : index
    %24 = vector.load %arg3[%c0_14, %c0_15, %c0_16, %c0_17, %c0_18] : memref<1x4x1x4x64xbf16, #tpu.memory_space<vmem>>, vector<1x4x1x4x64xbf16>
    %25 = vector.shape_cast %24 : vector<1x4x1x4x64xbf16> to vector<4x4x64xbf16>
    %26 = arith.extf %25 : vector<4x4x64xbf16> to vector<4x4x64xf32>
    %27 = vector.shape_cast %0 : vector<1x64xf32> to vector<1x1x64xf32>
    %28 = vector.broadcast %27 : vector<1x1x64xf32> to vector<4x4x64xf32>
    %29 = arith.mulf %26, %28 : vector<4x4x64xf32>
    %30 = vector.shape_cast %1 : vector<1x64xf32> to vector<1x1x64xf32>
    %31 = vector.broadcast %30 : vector<1x1x64xf32> to vector<4x4x64xf32>
    %32 = arith.addf %29, %31 : vector<4x4x64xf32>
    %cst_19 = arith.constant 0.000000e+00 : f32
    %33 = vector.broadcast %cst_19 : f32 to vector<4x4x64xf32>
    %34 = arith.maximumf %32, %33 : vector<4x4x64xf32>
    %c0_20 = arith.constant 0 : index
    %c0_21 = arith.constant 0 : index
    %c0_22 = arith.constant 0 : index
    %c0_23 = arith.constant 0 : index
    %c0_24 = arith.constant 0 : index
    %35 = vector.load %arg4[%c0_20, %c0_21, %c0_22, %c0_23, %c0_24] : memref<1x4x1x4x64xbf16, #tpu.memory_space<vmem>>, vector<1x4x1x4x64xbf16>
    %36 = vector.shape_cast %35 : vector<1x4x1x4x64xbf16> to vector<4x4x64xbf16>
    %37 = arith.extf %36 : vector<4x4x64xbf16> to vector<4x4x64xf32>
    %38 = vector.shape_cast %0 : vector<1x64xf32> to vector<1x1x64xf32>
    %39 = vector.broadcast %38 : vector<1x1x64xf32> to vector<4x4x64xf32>
    %40 = arith.mulf %37, %39 : vector<4x4x64xf32>
    %41 = vector.shape_cast %1 : vector<1x64xf32> to vector<1x1x64xf32>
    %42 = vector.broadcast %41 : vector<1x1x64xf32> to vector<4x4x64xf32>
    %43 = arith.addf %40, %42 : vector<4x4x64xf32>
    %cst_25 = arith.constant 0.000000e+00 : f32
    %44 = vector.broadcast %cst_25 : f32 to vector<4x4x64xf32>
    %45 = arith.maximumf %43, %44 : vector<4x4x64xf32>
    %46 = arith.maximumf %12, %34 : vector<4x4x64xf32>
    %cst_26 = arith.constant 0.000000e+00 : f32
    %47 = vector.broadcast %cst_26 : f32 to vector<1x4x64xf32>
    %48 = vector.extract_strided_slice %34 {offsets = [0, 0, 0], sizes = [3, 4, 64], strides = [1, 1, 1]} : vector<4x4x64xf32> to vector<3x4x64xf32>
    %49 = tpu.concatenate %47, %48 in 0 : vector<1x4x64xf32>, vector<3x4x64xf32> -> vector<4x4x64xf32>
    %50 = arith.maximumf %46, %49 : vector<4x4x64xf32>
    %51 = arith.maximumf %23, %45 : vector<4x4x64xf32>
    %cst_27 = arith.constant 0.000000e+00 : f32
    %52 = vector.broadcast %cst_27 : f32 to vector<1x4x64xf32>
    %53 = vector.extract_strided_slice %45 {offsets = [0, 0, 0], sizes = [3, 4, 64], strides = [1, 1, 1]} : vector<4x4x64xf32> to vector<3x4x64xf32>
    %54 = tpu.concatenate %52, %53 in 0 : vector<1x4x64xf32>, vector<3x4x64xf32> -> vector<4x4x64xf32>
    %55 = arith.maximumf %51, %54 : vector<4x4x64xf32>
    %56 = arith.maximumf %50, %55 : vector<4x4x64xf32>
    %cst_28 = arith.constant 0.000000e+00 : f32
    %57 = vector.broadcast %cst_28 : f32 to vector<4x1x64xf32>
    %58 = vector.extract_strided_slice %55 {offsets = [0, 0, 0], sizes = [4, 3, 64], strides = [1, 1, 1]} : vector<4x4x64xf32> to vector<4x3x64xf32>
    %59 = tpu.concatenate %57, %58 in 1 : vector<4x1x64xf32>, vector<4x3x64xf32> -> vector<4x4x64xf32>
    %60 = arith.maximumf %56, %59 : vector<4x4x64xf32>
    %c0_29 = arith.constant 0 : index
    %c0_30 = arith.constant 0 : index
    %c0_31 = arith.constant 0 : index
    %c0_32 = arith.constant 0 : index
    %61 = vector.load %arg7[%c0_29, %c0_30, %c0_31, %c0_32] : memref<1x4x4x64xf32, #tpu.memory_space<vmem>>, vector<1x4x4x64xf32>
    %62 = vector.shape_cast %61 : vector<1x4x4x64xf32> to vector<4x4x64xf32>
    %63 = vector.shape_cast %60 : vector<4x4x64xf32> to vector<1x4x4x64xf32>
    tpu.vector_store %arg7[%c0_29, %c0_30, %c0_31, %c0_32], %63 {strides = array<i32>} : memref<1x4x4x64xf32, #tpu.memory_space<vmem>>, vector<1x4x4x64xf32>,
    return
  }
  func.func @transform_0(%arg0: i32) -> (i32, i32, i32, i32, i32) {
    %c2_i32 = arith.constant 2 : i32
    %0 = arith.muli %c2_i32, %arg0 : i32
    %c0_i32 = arith.constant 0 : i32
    %1 = arith.addi %0, %c0_i32 : i32
    %c0_i32_0 = arith.constant 0 : i32
    %c0_i32_1 = arith.constant 0 : i32
    %c0_i32_2 = arith.constant 0 : i32
    %c0_i32_3 = arith.constant 0 : i32
    %c0_i32_4 = arith.constant 0 : i32
    return %1, %c0_i32_0, %c0_i32_1, %c0_i32_2, %c0_i32_3 : i32, i32, i32, i32, i32
  }
  func.func @transform_1(%arg0: i32) -> (i32, i32, i32, i32, i32) {
    %c2_i32 = arith.constant 2 : i32
    %0 = arith.muli %c2_i32, %arg0 : i32
    %c0_i32 = arith.constant 0 : i32
    %1 = arith.addi %0, %c0_i32 : i32
    %c0_i32_0 = arith.constant 0 : i32
    %c1_i32 = arith.constant 1 : i32
    %c0_i32_1 = arith.constant 0 : i32
    %c0_i32_2 = arith.constant 0 : i32
    %c0_i32_3 = arith.constant 0 : i32
    return %1, %c0_i32_0, %c1_i32, %c0_i32_1, %c0_i32_2 : i32, i32, i32, i32, i32
  }
  func.func @transform_2(%arg0: i32) -> (i32, i32, i32, i32, i32) {
    %c2_i32 = arith.constant 2 : i32
    %0 = arith.muli %c2_i32, %arg0 : i32
    %c1_i32 = arith.constant 1 : i32
    %1 = arith.addi %0, %c1_i32 : i32
    %c0_i32 = arith.constant 0 : i32
    %c0_i32_0 = arith.constant 0 : i32
    %c0_i32_1 = arith.constant 0 : i32
    %c0_i32_2 = arith.constant 0 : i32
    %c0_i32_3 = arith.constant 0 : i32
    return %1, %c0_i32, %c0_i32_0, %c0_i32_1, %c0_i32_2 : i32, i32, i32, i32, i32
  }
  func.func @transform_3(%arg0: i32) -> (i32, i32, i32, i32, i32) {
    %c2_i32 = arith.constant 2 : i32
    %0 = arith.muli %c2_i32, %arg0 : i32
    %c1_i32 = arith.constant 1 : i32
    %1 = arith.addi %0, %c1_i32 : i32
    %c0_i32 = arith.constant 0 : i32
    %c1_i32_0 = arith.constant 1 : i32
    %c0_i32_1 = arith.constant 0 : i32
    %c0_i32_2 = arith.constant 0 : i32
    %c0_i32_3 = arith.constant 0 : i32
    return %1, %c0_i32, %c1_i32_0, %c0_i32_1, %c0_i32_2 : i32, i32, i32, i32, i32
  }
  func.func @transform_4(%arg0: i32) -> (i32, i32) {
    %c0_i32 = arith.constant 0 : i32
    %c0_i32_0 = arith.constant 0 : i32
    %c0_i32_1 = arith.constant 0 : i32
    return %c0_i32, %c0_i32_0 : i32, i32
  }
  func.func @transform_5(%arg0: i32) -> (i32, i32) {
    %c0_i32 = arith.constant 0 : i32
    %c0_i32_0 = arith.constant 0 : i32
    %c0_i32_1 = arith.constant 0 : i32
    return %c0_i32, %c0_i32_0 : i32, i32
  }
  func.func @transform_6(%arg0: i32) -> (i32, i32, i32, i32) {
    %c0_i32 = arith.constant 0 : i32
    %c0_i32_0 = arith.constant 0 : i32
    %c0_i32_1 = arith.constant 0 : i32
    %c0_i32_2 = arith.constant 0 : i32
    return %arg0, %c0_i32, %c0_i32_0, %c0_i32_1 : i32, i32, i32, i32
  }
}

</mosaic_0001>

<bundles_post_ra>
// kernel: resnet_top_forward.3
= control target key start
LH: loop header
LB: loop body
LE: loop exit
PB: predicated region body
PF: predicated region fallthrough
CT: control target
= control target key end

     0   :  { %11 = vsyncpa [#allocation7], 0  ;;  %s1378_s0 = inlined_call_operand.vmem [shape: bf16[4,4,2,4,64], index: 0, kind: input, shape index: {}, may-alias: {0,1,2,3}]   ;;  %s1379_s1 = inlined_call_operand.vmem [shape: bf16[4,4,2,4,64], index: 1, kind: input, shape index: {}, may-alias: {0,1,2,3}]   ;;  %s1380_s2 = inlined_call_operand.vmem [shape: bf16[4,4,2,4,64], index: 2, kind: input, shape index: {}, may-alias: {0,1,2,3}]   ;;  %s1381_s3 = inlined_call_operand.vmem [shape: bf16[4,4,2,4,64], index: 3, kind: input, shape index: {}, may-alias: {0,1,2,3}]   ;;  %s1382_s4 = inlined_call_operand.vmem [shape: f32[1,64], index: 4, kind: input, shape index: {}]   ;;  %s1383_s5 = inlined_call_operand.vmem [shape: f32[1,64], index: 5, kind: input, shape index: {}]   ;;  %s1384_s6 = inlined_call_operand.hbm [shape: f32[2,4,4,64], index: 6, kind: output, shape index: {}]  }
   0x1   :  { %13 = vsyncpa [#allocation7 + $0x1], 0  ;;  %s1107_s21 = smov 0   ;;  %s1109_s22 = smov 0  }
   0x2   :  { %s1111_s23 = smov 0   ;;  %s1113_s24 = smov 0  }
   0x3   :  { %s1115_s25 = smov 0   ;;  %s1117_s26 = smov 0  }
   0x4   :  { %s1119_s27 = smov 0   ;;  %s1121_s28 = smov 0  }
   0x5 LB: > { %s1385_s29 = sadd.s32 4294967295, %s1067_s28   ;;  %s835_s30 = sadd.s32 4294967294, %s1067_s28   ;;  %s1067_s28 = sphi %s1121_s28, %s1400_s28   ;;  %s1063_s27 = sphi %s1119_s27, %s1399_s27   ;;  %s1059_s26 = sphi %s1117_s26, %s1398_s26   ;;  %s1055_s25 = sphi %s1115_s25, %s1397_s25   ;;  %s1051_s24 = sphi %s1113_s24, %s1396_s24   ;;  %s1047_s23 = sphi %s1111_s23, %s1395_s23   ;;  %s1043_s22 = sphi %s1109_s22, %s1394_s22   ;;  %s1039_s21 = sphi %s1107_s21, %s1393_s21  }
   0x6   : > { %s1150_s7 = sadd.s32 1, %s1067_s28   ;;  %s836_s8 = sshll.u32 %s1067_s28, 1 }
   0x7   : > { %s886_s9 = sadd.s32 2, %s836_s8  ;;  %s28_s10 = sadd.s32 1, %s1063_s27 }
   0x8   : > { %s25_s11 = ssub.s32 %s836_s8, %s886_s9  ;;  %p35_p0 = scmp.ne.s32.totalorder %s1063_s27, %s1059_s26 }
   0x9   : > { %p26_p1 = scmp.eq.s32.totalorder %s25_s11, 0  ;;  %p36_p2 = scmp.eq.s32.totalorder %s1067_s28, 0 }
   0xa   : > { %s80_s12 = sadd.s32 1, %s836_s8  ;;  %s82_s13 = sadd.s32 1, %s886_s9 }
   0xb   : > { %s1158_s14 = scalar_select %p26_p1, %s1063_s27, %s28_s10  }
   0xc   : > { %p1160_p3 = por %p36_p2, %p35_p0  ;;  %s83_s16 = ssub.s32 %s80_s12, %s82_s13 }
   0xd   : > { %1386 = sst [smem:[#allocation9_spill]] %s1158_s14  ;;  %p84_p4 = scmp.eq.s32.totalorder %s83_s16, 0 }
   0xe   : > { %s86_s17 = sadd.s32 1, %s1055_s25  ;;  %p93_p5 = scmp.ne.s32.totalorder %s1055_s25, %s1051_s24 }
   0xf   : > { %s181_s18 = ssub.s32 %s1067_s28, %s1150_s7  ;;  %s184_s8 = sadd.s32 1, %s1047_s23 }
  0x10   : > { %s1170_s19 = scalar_select %p84_p4, %s1055_s25, %s86_s17  }
  0x11   : > { %p1172_p6 = por %p93_p5, %p36_p2  ;;  %p182_p7 = scmp.eq.s32.totalorder %s181_s18, 0 }
  0x12   : > { %p194_p8 = scmp.ne.s32.totalorder %s1047_s23, %s1043_s22  ;;  %p195_p9 = scmp.eq.s32.totalorder %s1385_s29, 1 }
  0x13   : > { %s1180_s9 = scalar_select %p182_p7, %s1047_s23, %s184_s8  }
  0x14   : > { %p200_p10 = scmp.ne.s32.totalorder %s1043_s22, %s1039_s21  ;;  %p201_p11 = scmp.eq.s32.totalorder %s835_s30, 1 }
  0x15   : > { %p1186_p12 = por %p195_p9, %p194_p8  ;;  %p845_p0 = scmp.ge.s32.totalorder %s1067_s28, 2 }
  0x16   : > { %p1190_p13 = por %p201_p11, %p200_p10 }
  0x17   : > { %223 = sbr.rel (%p845_p0) target bundleno = 58 (0x3a), region = 24 }
  0x1e   : > { %226 = sbr.rel (!%p1160_p3) target bundleno = 37 (0x25), region = 28  ;;  %s228_s12 = sand.u32 (%p1160_p3), 1, %s1063_s27  }
  0x1f   : > { %s894_s30 = sshll.u32 (%p1160_p3), %s1067_s28, 5  ;;  %s846_s13 = sshll.u32 (%p1160_p3), %s228_s12, 3 }
  0x20   : > { %s234_s18 = scalar_lea.vmem (%p1160_p3), %s1378_s0, %s894_s30  ;;  %s230_s8 = scalar_lea.vmem (%p1160_p3), [#allocation2], %s846_s13 }
  0x21   : > { %v250_v0 = vld [vmem:[%s234_s18] sm:$0x3] (%p1160_p3)  ;;  %v252_v1 = vld [vmem:[%s234_s18 + $0x4] sm:$0x3] (%p1160_p3)  ;;  %v254_v2 = vld [vmem:[%s234_s18 + $0x8] sm:$0x3] (%p1160_p3) }
  0x22   : > { %251 = vst [vmem:[%s230_s8] sm:$0x3] (%p1160_p3), %v250_v0  ;;  %253 = vst [vmem:[%s230_s8 + $0x2] sm:$0x3] (%p1160_p3), %v252_v1  ;;  %v256_v3 = vld [vmem:[%s234_s18 + $0xc] sm:$0x3] (%p1160_p3) }
  0x23   : > { %255 = vst [vmem:[%s230_s8 + $0x4] sm:$0x3] (%p1160_p3), %v254_v2  ;;  %257 = vst [vmem:[%s230_s8 + $0x6] sm:$0x3] (%p1160_p3), %v256_v3 }
  0x25 PF: > { %288 = sbr.rel (!%p1160_p3) target bundleno = 44 (0x2c), region = 69  ;;  %s290_s12 = sand.u32 (%p1160_p3), 1, %s1063_s27  }
  0x26   : > { %s895_s29 = sshll.u32 (%p1160_p3), %s1067_s28, 5  ;;  %s850_s14 = sshll.u32 (%p1160_p3), %s290_s12, 3 }
  0x27   : > { %s738_s17 = scalar_lea.vmem (%p1160_p3), %s1379_s1, %s895_s29  ;;  %s292_s13 = scalar_lea.vmem (%p1160_p3), [#allocation3], %s850_s14 }
  0x28   : > { %v853_v4 = vld [vmem:[%s738_s17 + $0x2] sm:$0x3] (%p1160_p3)  ;;  %v854_v5 = vld [vmem:[%s738_s17 + $0x6] sm:$0x3] (%p1160_p3)  ;;  %v855_v6 = vld [vmem:[%s738_s17 + $0xa] sm:$0x3] (%p1160_p3) }
  0x29   : > { %314 = vst [vmem:[%s292_s13] sm:$0x3] (%p1160_p3), %v853_v4  ;;  %316 = vst [vmem:[%s292_s13 + $0x2] sm:$0x3] (%p1160_p3), %v854_v5  ;;  %v856_v7 = vld [vmem:[%s738_s17 + $0xe] sm:$0x3] (%p1160_p3) }
  0x2a   : > { %318 = vst [vmem:[%s292_s13 + $0x4] sm:$0x3] (%p1160_p3), %v855_v6  ;;  %320 = vst [vmem:[%s292_s13 + $0x6] sm:$0x3] (%p1160_p3), %v856_v7 }
  0x2c PF: > { %351 = sbr.rel (!%p1172_p6) target bundleno = 51 (0x33), region = 110  ;;  %s353_s15 = sand.u32 (%p1172_p6), 1, %s1055_s25  }
  0x2d   : > { %s896_s18 = sshll.u32 (%p1172_p6), %s1067_s28, 5  ;;  %s857_s8 = sshll.u32 (%p1172_p6), %s353_s15, 3 }
  0x2e   : > { %s744_s16 = scalar_lea.vmem (%p1172_p6), %s1380_s2, %s896_s18  ;;  %s355_s14 = scalar_lea.vmem (%p1172_p6), [#allocation4], %s857_s8 }
  0x2f   : > { %v860_v8 = vld [vmem:[%s744_s16 + $0x10] sm:$0x3] (%p1172_p6)  ;;  %v861_v9 = vld [vmem:[%s744_s16 + $0x14] sm:$0x3] (%p1172_p6)  ;;  %v862_v10 = vld [vmem:[%s744_s16 + $0x18] sm:$0x3] (%p1172_p6) }
  0x30   : > { %377 = vst [vmem:[%s355_s14] sm:$0x3] (%p1172_p6), %v860_v8  ;;  %379 = vst [vmem:[%s355_s14 + $0x2] sm:$0x3] (%p1172_p6), %v861_v9  ;;  %v863_v11 = vld [vmem:[%s744_s16 + $0x1c] sm:$0x3] (%p1172_p6) }
  0x31   : > { %381 = vst [vmem:[%s355_s14 + $0x4] sm:$0x3] (%p1172_p6), %v862_v10  ;;  %383 = vst [vmem:[%s355_s14 + $0x6] sm:$0x3] (%p1172_p6), %v863_v11 }
  0x33 PF: > { %414 = sbr.rel (!%p1172_p6) target bundleno = 58 (0x3a), region = 151  ;;  %s416_s30 = sand.u32 (%p1172_p6), 1, %s1055_s25  }
  0x34   : > { %s898_s17 = sshll.u32 (%p1172_p6), %s1067_s28, 5  ;;  %s864_s13 = sshll.u32 (%p1172_p6), %s416_s30, 3 }
  0x35   : > { %s751_s12 = scalar_lea.vmem (%p1172_p6), %s1381_s3, %s898_s17  ;;  %s418_s8 = scalar_lea.vmem (%p1172_p6), [#allocation5], %s864_s13 }
  0x36   : > { %v868_v12 = vld [vmem:[%s751_s12 + $0x12] sm:$0x3] (%p1172_p6)  ;;  %v869_v13 = vld [vmem:[%s751_s12 + $0x16] sm:$0x3] (%p1172_p6)  ;;  %v870_v14 = vld [vmem:[%s751_s12 + $0x1a] sm:$0x3] (%p1172_p6) }
  0x37   : > { %441 = vst [vmem:[%s418_s8] sm:$0x3] (%p1172_p6), %v868_v12  ;;  %443 = vst [vmem:[%s418_s8 + $0x2] sm:$0x3] (%p1172_p6), %v869_v13  ;;  %v871_v15 = vld [vmem:[%s751_s12 + $0x1e] sm:$0x3] (%p1172_p6) }
  0x38   : > { %445 = vst [vmem:[%s418_s8 + $0x4] sm:$0x3] (%p1172_p6), %v870_v14  ;;  %447 = vst [vmem:[%s418_s8 + $0x6] sm:$0x3] (%p1172_p6), %v871_v15 }
  0x3a PF: > { %p872_p1 = scmp.ge.s32.totalorder %s1067_s28, 1  ;;  %p477_p2 = scmp.lt.s32.totalorder %s1067_s28, 3 }
  0x3c   : > { %p478_p3 = pnand %p872_p1, %p477_p2 }
  0x3d   : > { %s484_s20 = sand.u32 (!%p478_p3), 1, %s1059_s26   ;;  %s498_s29 = sand.u32 (!%p478_p3), 1, %s1051_s24   ;;  %v1232_v16 = vld [vmem:[%s1382_s4] ss:$0 sm:$0xff] (!%p478_p3)  ;;  %vm678_vm0 = vcmask (!%p478_p3), 1040384   ;;  %vm687_vm1 = vcmask (!%p478_p3), 519168  }
  0x3e   : > { %481 = sbr.rel (%p478_p3) target bundleno = 114 (0x72), region = 192  ;;  %s873_s16 = sshll.u32 (!%p478_p3), %s484_s20, 3  ;;  %v1249_v23 = vld [vmem:[%s1383_s5] ss:$0 sm:$0xff] (!%p478_p3) }
  0x3f   : > { %s875_s14 = sshll.u32 (!%p478_p3), %s498_s29, 3  ;;  %s1234_s13 = scalar_lea.vmem (!%p478_p3), [#allocation2], %s873_s16 }
  0x40   : > { %v554_v17 = vld [vmem:[%s1234_s13] sm:$0x3] (!%p478_p3)  ;;  %s1237_s15 = scalar_lea.vmem (!%p478_p3), [#allocation3], %s873_s16  ;;  %s1240_s24 = scalar_lea.vmem (!%p478_p3), [#allocation4], %s875_s14  ;;  %v555_v26 = vld [vmem:[%s1234_s13 + $0x2] sm:$0x3] (!%p478_p3) }
  0x41   : > { %v586_v18 = vld [vmem:[%s1237_s15] sm:$0x3] (!%p478_p3)  ;;  %v558_v19 = vunpack.c.l.bf16 (!%p478_p3), %v554_v17  ;;  %v606_v21 = vld [vmem:[%s1240_s24] sm:$0x3] (!%p478_p3)  ;;  %s1243_s26 = scalar_lea.vmem (!%p478_p3), [#allocation5], %s875_s14  ;;  %v559_v30 = vunpack.c.l.bf16 (!%p478_p3), %v555_v26  ;;  %s543_s8 = sand.u32 (!%p478_p3), 1, %s1043_s22  }
  0x42   : > { %v590_v20 = vunpack.c.l.bf16 (!%p478_p3), %v586_v18  ;;  %v626_v22 = vld [vmem:[%s1243_s26] sm:$0x3] (!%p478_p3)  ;;  %v610_v24 = vunpack.c.l.bf16 (!%p478_p3), %v606_v21  ;;  %v587_v27 = vld [vmem:[%s1237_s15 + $0x2] sm:$0x3] (!%p478_p3)  ;;  %v607_v32 = vld [vmem:[%s1240_s24 + $0x2] sm:$0x3] (!%p478_p3) }
  0x43   : > { %v630_v25 = vunpack.c.l.bf16 (!%p478_p3), %v626_v22  ;;  %v568_v28 = vmul.f32 (!%p478_p3), %v1232_v16, %v558_v19  ;;  %v591_v31 = vunpack.c.l.bf16 (!%p478_p3), %v587_v27  ;;  %v627_v33 = vld [vmem:[%s1243_s26 + $0x2] sm:$0x3] (!%p478_p3)  ;;  %v611_v36 = vunpack.c.l.bf16 (!%p478_p3), %v607_v32  ;;  %v556_v46 = vld [vmem:[%s1234_s13 + $0x4] sm:$0x3] (!%p478_p3)  ;;  %v588_v47 = vld [vmem:[%s1237_s15 + $0x4] sm:$0x3] (!%p478_p3) }
  0x44   : > { %v594_v29 = vmul.f32 (!%p478_p3), %v1232_v16, %v590_v20  ;;  %v614_v34 = vmul.f32 (!%p478_p3), %v1232_v16, %v610_v24  ;;  %v631_v37 = vunpack.c.l.bf16 (!%p478_p3), %v627_v33  ;;  %v569_v40 = vmul.f32 (!%p478_p3), %v1232_v16, %v559_v30  ;;  %v608_v56 = vld [vmem:[%s1240_s24 + $0x4] sm:$0x3] (!%p478_p3)  ;;  %v628_v57 = vld [vmem:[%s1243_s26 + $0x4] sm:$0x3] (!%p478_p3)  ;;  %s877_s20 = sshll.u32 (!%p478_p3), %s543_s8, 4  ;;  %s1391_s16 = sadd.s32 (!%p478_p3), 4294967295, %s1067_s28  }
  0x45   : > { %v634_v35 = vmul.f32 %v1232_v16, %v630_v25  ;;  %v578_v38 = vadd.f32 %v1249_v23, %v568_v28  ;;  %v595_v41 = vmul.f32 %v1232_v16, %v591_v31  ;;  %v615_v44 = vmul.f32 %v1232_v16, %v611_v36  ;;  %v557_v14 = vld [vmem:[%s1234_s13 + $0x6] sm:$0x3]  ;;  %v589_v20 = vld [vmem:[%s1237_s15 + $0x6] sm:$0x3]  ;;  %s1293_s29 = scalar_lea.vmem [#allocation6], %s877_s20  ;;  %s899_s14 = sshll.u32 %s1391_s16, 8 }
  0x46   : > { %v598_v39 = vadd.f32 %v1249_v23, %v594_v29  ;;  %v618_v42 = vadd.f32 %v1249_v23, %v614_v34  ;;  %v635_v45 = vmul.f32 %v1232_v16, %v631_v37  ;;  %v579_v50 = vadd.f32 %v1249_v23, %v569_v40  ;;  %v609_v26 = vld [vmem:[%s1240_s24 + $0x6] sm:$0x3]  ;;  %v629_v27 = vld [vmem:[%s1243_s26 + $0x6] sm:$0x3]  ;;  %s706_s30 = sshll.u32 %s1293_s29, 4  ;;  %s1316_s15 = scalar_lea.hbm %s1384_s6, %s899_s14  ;;  %s1318_s30 = int_to_ptr.vmem [resolvable:$true] %s706_s30 }
  0x47   : > { %v638_v43 = vadd.f32 %v1249_v23, %v634_v35  ;;  %v582_v48 = vmax.f32 %v578_v38, 0.0  ;;  %v599_v51 = vadd.f32 %v1249_v23, %v595_v41  ;;  %v619_v54 = vadd.f32 %v1249_v23, %v615_v44  ;;  %s1324_s24 = scalar_lea.sflag [#allocation7], %s543_s8  ;;  %s973_s26 = scalar_lea.vmem %s1318_s30, 256 }
  0x48   : > { %v602_v49 = vmax.f32 %v598_v39, 0.0  ;;  %v622_v52 = vmax.f32 %v618_v42, 0.0  ;;  %v639_v55 = vadd.f32 %v1249_v23, %v635_v45  ;;  %v583_v58 = vmax.f32 %v579_v50, 0.0  ;;  %p974_p4 = scmp.ne.s32.totalorder %s1318_s30, %s973_s26  ;;  %s1069_s18 = smov [#allocation6]  }
  0x49   : > { %v642_v53 = vmax.f32 %v638_v43, 0.0  ;;  %v603_v59 = vmax.f32 %v599_v51, 0.0  ;;  %v560_v60 = vunpack.c.l.bf16 %v556_v46  ;;  %v592_v61 = vunpack.c.l.bf16 %v588_v47  ;;  %s977_s12 = sshll.u32 %s1069_s18, 4  ;;  %s978_s12 = int_to_ptr.vmem [resolvable:$false] %s977_s12 }
  0x4a   : > { %v646_v62 = vmax.f32 %v582_v48, %v622_v52  ;;  %v623_v0 = vmax.f32 %v619_v54, 0.0  ;;  %v643_v1 = vmax.f32 %v639_v55, 0.0  ;;  %v612_v4 = vunpack.c.l.bf16 %v608_v56  ;;  %p975_p5 = pnand %p974_p4, %p1186_p12  ;;  %s979_s20 = scalar_lea.vmem %s978_s12, 512 }
  0x4b   : > { %v654_v63 = vmax.f32 %v602_v49, %v642_v53  ;;  %v570_v2 = vmul.f32 %v1232_v16, %v560_v60  ;;  %v596_v3 = vmul.f32 %v1232_v16, %v592_v61  ;;  %v632_v5 = vunpack.c.l.bf16 %v628_v57  ;;  %p980_p7 = scmp.lt.s32.totalorder %s1318_s30, %s978_s12  ;;  %p981_p8 = scmp.lt.s32.totalorder %s979_s20, %s973_s26 }
  0x4c   : > { %v650_v6 = vmax.f32 %v646_v62, 0.0  ;;  %v647_v8 = vmax.f32 %v583_v58, %v623_v0  ;;  %v655_v9 = vmax.f32 %v603_v59, %v643_v1  ;;  %v616_v12 = vmul.f32 %v1232_v16, %v612_v4  ;;  %p976_p6 = pneg %p975_p5 }
  0x4d   : > { %v658_v7 = vmax.f32 %v654_v63, 0.0  ;;  %v580_v10 = vadd.f32 %v1249_v23, %v570_v2  ;;  %v600_v11 = vadd.f32 %v1249_v23, %v596_v3  ;;  %v636_v13 = vmul.f32 %v1232_v16, %v632_v5  ;;  %p982_p9 = por %p981_p8, %p980_p7 }
  0x4e   : > { %v651_v18 = vmax.f32 %v647_v8, %v622_v52  ;;  %v659_v19 = vmax.f32 %v655_v9, %v642_v53  ;;  %v620_v24 = vadd.f32 %v1249_v23, %v616_v12  ;;  %v561_v31 = vunpack.c.l.bf16 %v557_v14 }
  0x4f   : > { %v662_v15 = vmax.f32 %v650_v6, %v658_v7  ;;  %v670_v17 = vrot.slane %v658_v7, 7  ;;  %v584_v21 = vmax.f32 %v580_v10, 0.0  ;;  %v604_v22 = vmax.f32 %v600_v11, 0.0  ;;  %p983_p10 = pnand %p982_p9, %p976_p6 }
  0x50   : > { %v640_v25 = vadd.f32 %v1249_v23, %v636_v13  ;;  %v663_v29 = vmax.f32 %v651_v18, %v659_v19  ;;  %v671_v30 = vrot.slane %v659_v19, 7  ;;  %v624_v33 = vmax.f32 %v620_v24, 0.0 }
  0x51   : > { %v679_v28 = vsel %vm678_vm0, 0.0, %v670_v17  ;;  %v593_v35 = vunpack.c.l.bf16 %v589_v20  ;;  %v571_v37 = vmul.f32 %v1232_v16, %v561_v31  ;;  %v613_v38 = vunpack.c.l.bf16 %v609_v26 }
  0x52   : > { %v683_v32 = vmax.f32 %v662_v15, %v679_v28  ;;  %v644_v34 = vmax.f32 %v640_v25, 0.0  ;;  %v680_v36 = vsel %vm678_vm0, 0.0, %v671_v30  ;;  %v633_v39 = vunpack.c.l.bf16 %v629_v27 }
  0x53   : > { %v684_v40 = vmax.f32 %v663_v29, %v680_v36  ;;  %v648_v41 = vmax.f32 %v584_v21, %v624_v33  ;;  %v597_v43 = vmul.f32 %v1232_v16, %v593_v35  ;;  %v581_v44 = vadd.f32 %v1249_v23, %v571_v37 }
  0x54   : > { %688 = vst.msk [vmem:[%s1293_s29] sm:$0xf] %vm687_vm1, %v683_v32  ;;  %v656_v42 = vmax.f32 %v604_v22, %v644_v34  ;;  %v617_v45 = vmul.f32 %v1232_v16, %v613_v38  ;;  %v637_v46 = vmul.f32 %v1232_v16, %v633_v39 }
  0x55   : > { %689 = vst.msk [vmem:[%s1293_s29 + $0x4] sm:$0xf] %vm687_vm1, %v684_v40  ;;  %v652_v47 = vmax.f32 %v648_v41, %v623_v0  ;;  %v601_v49 = vadd.f32 %v1249_v23, %v597_v43  ;;  %v585_v50 = vmax.f32 %v581_v44, 0.0 }
  0x56   : > { %v660_v48 = vmax.f32 %v656_v42, %v643_v1  ;;  %v621_v51 = vadd.f32 %v1249_v23, %v617_v45  ;;  %v641_v52 = vadd.f32 %v1249_v23, %v637_v46 }
  0x57   : > { %v605_v55 = vmax.f32 %v601_v49, 0.0 }
  0x58   : > { %v664_v53 = vmax.f32 %v652_v47, %v660_v48  ;;  %v672_v54 = vrot.slane %v660_v48, 7  ;;  %v625_v56 = vmax.f32 %v621_v51, 0.0  ;;  %v645_v57 = vmax.f32 %v641_v52, 0.0 }
  0x5a   : > { %v681_v16 = vsel %vm678_vm0, 0.0, %v672_v54  ;;  %v649_v59 = vmax.f32 %v585_v50, %v625_v56  ;;  %v657_v60 = vmax.f32 %v605_v55, %v645_v57 }
  0x5b   : > { %v685_v58 = vmax.f32 %v664_v53, %v681_v16 }
  0x5c   : > { %v653_v61 = vmax.f32 %v649_v59, %v624_v33  ;;  %v661_v62 = vmax.f32 %v657_v60, %v644_v34 }
  0x5d   : > { %690 = vst.msk [vmem:[%s1293_s29 + $0x8] sm:$0xf] %vm687_vm1, %v685_v58 }
  0x5e   : > { %v665_v23 = vmax.f32 %v653_v61, %v661_v62  ;;  %v673_v63 = vrot.slane %v661_v62, 7 }
  0x60   : > { %v682_v0 = vsel %vm678_vm0, 0.0, %v673_v63 }
  0x61   : > { %v686_v1 = vmax.f32 %v665_v23, %v682_v0 }
  0x63   : > { %691 = vst.msk [vmem:[%s1293_s29 + $0xc] sm:$0xf] %vm687_vm1, %v686_v1 }
  0x64   : > { %986 = shalt.err (!%p983_p10)
}
  0x65   : > { %s987_s8 = scalar_lea.hbm %s1316_s15, 256  ;;  %s991_s14 = scalar_lea.hbm %s1384_s6, 512 }
  0x66   : > { %p988_p11 = scmp.ne.s32.totalorder %s1316_s15, %s987_s8  ;;  %p992_p3 = scmp.lt.u32.totalorder %s1316_s15, %s1384_s6 }
  0x67   : > { %p993_p4 = scmp.lt.u32.totalorder %s991_s14, %s987_s8  ;;  %p995_p6 = scmp.lt.u32.totalorder %s987_s8, %s1316_s15 }
  0x68   : > { %p989_p1 = pnand %p988_p11, %p1186_p12 }
  0x69   : > { %p994_p5 = por %p993_p4, %p992_p3 }
  0x6a   : > { %p990_p2 = pneg %p989_p1 }
  0x6b   : > { %p996_p7 = por %p995_p6, %p994_p5 }
  0x6d   : > { %p997_p8 = pnand %p996_p7, %p990_p2 }
  0x6f   : > { %1000 = shalt.err (!%p997_p8)
}
  0x70   : > { %s1070_s26 = smov 64   ;;  %s1071_s18 = smov 4  }
  0x71   : > { %900 = dma.vmem_to_hbm [thread:$0]  (%p1186_p12), %s1318_s30, 256, %s1316_s15, %s1324_s24, %s1070_s26, %s1070_s26, %s1071_s18  }
  0x72 PF: > { %s721_s12 = sand.u32 1, %s1039_s21   ;;  %p903_p9 = pnand %p845_p0, %p1190_p13 }
  0x73   : > { %s722_s20 = scalar_lea.sflag [#allocation7], %s721_s12 }
  0x74   : > { %1034 = dma.done.wait (!%p903_p9), %s722_s20, 256  }
  0x75   : > { %1036 = vsyncadd (!%p903_p9), %s722_s20, 4294967040  ;;  %s1392_s10 = sld [smem:[#allocation9_spill]]  ;;  %p16_p12 = scmp.ge.s32.totalorder %s1150_s7, 4  }
  0x76   : > { %s1393_s21 = smov %s1043_s22  ;;  %s1394_s22 = smov %s1047_s23 }
  0x77   : > { %s1395_s23 = smov %s1180_s9  ;;  %s1396_s24 = smov %s1055_s25 }
  0x78   : > { %s1397_s25 = smov %s1170_s19  ;;  %s1398_s26 = smov %s1063_s27 }
  0x79   : > { %s1400_s28 = smov %s1150_s7  ;;  %18 = sbr.rel (!%p16_p12) target bundleno = 5 (0x5), region = 272 }
  0x7b   : > { %s1399_s27 = smov %s1392_s10 }
  0x80   :  { %727 = vsyncpa [#allocation7], 1 }
  0x81   :  { %729 = vsyncpa [#allocation7 + $0x1], 1 }

// kernel: resnet_top_forward.2
= control target key start
LH: loop header
LB: loop body
LE: loop exit
PB: predicated region body
PF: predicated region fallthrough
CT: control target
= control target key end

     0   :  { %v609_v0 = vmov 0   ;;  %vm182_vm0 = vcmask 261120   ;;  %vm368_vm1 = vcmask 519168   ;;  %vm385_vm2 = vcmask 523264   ;;  %s857_s1 = inlined_call_operand.vmem [shape: bf16[160,64], index: 1, kind: input, shape index: {}]   ;;  %s858_s0 = inlined_call_operand.vmem [shape: bf16[128,160], index: 0, kind: input, shape index: {}]   ;;  %s859_s2 = inlined_call_operand.vmem [shape: bf16[128,64], index: 2, kind: output, shape index: {0}]   ;;  %s860_s3 = inlined_call_operand.vmem [shape: f32[1,2,64], index: 3, kind: output, shape index: {1}]  }
   0x1   :  { %207 = vmatprep.subr.bf16.mxu0 %v609_v0  ;;  %v575_v1 = vld [vmem:[%s857_s1] sm:$0xff]   ;;  %554 = vmatprep.subr.bf16.mxu1 %v609_v0  ;;  %v576_v2 = vld [vmem:[%s857_s1 + $0x8] sm:$0xff]   ;;  %v577_v3 = vld [vmem:[%s857_s1 + $0x10] sm:$0xff]   ;;  %vm476_vm3 = vcmask 1040384   ;;  %vm478_vm4 = vcmask 517120  }
   0x2   :  { %208 = vmatpush1.bf16.msra.mxu0 %v575_v1  ;;  %564 = vmatpush1.bf16.msra.mxu1 %v575_v1  ;;  %v578_v4 = vld [vmem:[%s857_s1 + $0x18] sm:$0xff]   ;;  %v587_v5 = vld [vmem:[%s858_s0 + $0x4] ss:$8 sps:$4 sm:$0xff]   ;;  %v581_v9 = vld [vmem:[%s857_s1 + $0x30] sm:$0xff]  }
   0x3   :  { %209 = vmatprep.subr.bf16.mxu0 %v609_v0  ;;  %555 = vmatprep.subr.bf16.mxu1 %v609_v0  ;;  %v593_v6 = vld [vmem:[%s858_s0 + $0x44] ss:$8 sps:$4 sm:$0xff]   ;;  %v582_v10 = vld [vmem:[%s857_s1 + $0x38] sm:$0xff]   ;;  %v585_v13 = vld [vmem:[%s858_s0] ss:$8 sps:$4 sm:$0xff]  }
   0x4   :  { %514 = vmatprep.mubr.msk.bf16.mxu0 %vm182_vm0, %v587_v5  ;;  %v579_v7 = vld [vmem:[%s857_s1 + $0x20] sm:$0xff]   ;;  %518 = vmatprep.mubr.msk.bf16.mxu1 %vm182_vm0, %v593_v6  ;;  %v580_v8 = vld [vmem:[%s857_s1 + $0x28] sm:$0xff]   ;;  %v588_v15 = vld [vmem:[%s858_s0 + $0x14] ss:$8 sps:$4 sm:$0xff]  }
   0x5   :  { %v583_v11 = vld [vmem:[%s857_s1 + $0x40] sm:$0xff]   ;;  %v584_v12 = vld [vmem:[%s857_s1 + $0x48] sm:$0xff]   ;;  %v597_v16 = vld [vmem:[%s858_s0 + $0x54] ss:$8 sps:$4 sm:$0xff]  }
   0x6   :  { %210 = vmatpush1.bf16.msra.mxu0 %v576_v2  ;;  %565 = vmatpush1.bf16.msra.mxu1 %v576_v2  ;;  %v591_v14 = vld [vmem:[%s858_s0 + $0x40] ss:$8 sps:$4 sm:$0xff]   ;;  %v590_v17 = vld [vmem:[%s858_s0 + $0x10] ss:$8 sps:$4 sm:$0xff]   ;;  %v594_v19 = vld [vmem:[%s858_s0 + $0x24] ss:$8 sps:$4 sm:$0xff]  }
   0x7   :  { %211 = vmatprep.subr.bf16.mxu0 %v609_v0  ;;  %556 = vmatprep.subr.bf16.mxu1 %v609_v0  ;;  %v599_v18 = vld [vmem:[%s858_s0 + $0x50] ss:$8 sps:$4 sm:$0xff]   ;;  %v603_v20 = vld [vmem:[%s858_s0 + $0x64] ss:$8 sps:$4 sm:$0xff]   ;;  %v596_v21 = vld [vmem:[%s858_s0 + $0x20] ss:$8 sps:$4 sm:$0xff]  }
   0x8   :  { %v605_v22 = vld [vmem:[%s858_s0 + $0x60] ss:$8 sps:$4 sm:$0xff]   ;;  %v600_v23 = vld [vmem:[%s858_s0 + $0x34] ss:$8 sps:$4 sm:$0xff]   ;;  %v602_v25 = vld [vmem:[%s858_s0 + $0x30] ss:$8 sps:$4 sm:$0xff]  }
   0x9   :  { %v606_v24 = vld [vmem:[%s858_s0 + $0x74] ss:$8 sps:$4 sm:$0xff]   ;;  %v608_v26 = vld [vmem:[%s858_s0 + $0x70] ss:$8 sps:$4 sm:$0xff]  }
   0xa   :  { %212 = vmatpush1.bf16.msra.mxu0 %v577_v3  ;;  %566 = vmatpush1.bf16.msra.mxu1 %v577_v3 }
   0xb   :  { %213 = vmatprep.subr.bf16.mxu0 %v609_v0  ;;  %557 = vmatprep.subr.bf16.mxu1 %v609_v0 }
   0xe   :  { %214 = vmatpush1.bf16.msra.mxu0 %v578_v4  ;;  %567 = vmatpush1.bf16.msra.mxu1 %v578_v4 }
   0xf   :  { %215 = vmatprep.subr.bf16.mxu0 %v609_v0  ;;  %558 = vmatprep.subr.bf16.mxu1 %v609_v0 }
  0x12   :  { %216 = vmatpush1.bf16.msra.mxu0 %v579_v7  ;;  %568 = vmatpush1.bf16.msra.mxu1 %v579_v7 }
  0x13   :  { %217 = vmatprep.subr.bf16.mxu0 %v609_v0  ;;  %559 = vmatprep.subr.bf16.mxu1 %v609_v0 }
  0x16   :  { %218 = vmatpush1.bf16.msra.mxu0 %v580_v8  ;;  %569 = vmatpush1.bf16.msra.mxu1 %v580_v8 }
  0x17   :  { %219 = vmatprep.subr.bf16.mxu0 %v609_v0  ;;  %560 = vmatprep.subr.bf16.mxu1 %v609_v0 }
  0x1a   :  { %220 = vmatpush1.bf16.msra.mxu0 %v581_v9  ;;  %570 = vmatpush1.bf16.msra.mxu1 %v581_v9 }
  0x1b   :  { %221 = vmatprep.subr.bf16.mxu0 %v609_v0  ;;  %561 = vmatprep.subr.bf16.mxu1 %v609_v0 }
  0x1e   :  { %222 = vmatpush1.bf16.msra.mxu0 %v582_v10  ;;  %571 = vmatpush1.bf16.msra.mxu1 %v582_v10 }
  0x1f   :  { %223 = vmatprep.subr.bf16.mxu0 %v609_v0  ;;  %562 = vmatprep.subr.bf16.mxu1 %v609_v0 }
  0x22   :  { %224 = vmatpush1.bf16.msra.mxu0 %v583_v11  ;;  %572 = vmatpush1.bf16.msra.mxu1 %v583_v11 }
  0x23   :  { %225 = vmatprep.subr.bf16.mxu0 %v609_v0  ;;  %563 = vmatprep.subr.bf16.mxu1 %v609_v0 }
  0x26   :  { %226 = vmatpush1.bf16.msra.mxu0 %v584_v12  ;;  %573 = vmatpush1.bf16.msra.mxu1 %v584_v12 }
  0x29   :  { %240 = vmatmul.mubr.bf16.vlgmr.msra.gmra.mrb[0].mxu0 %v585_v13  ;;  %272 = vmatmul.mubr.bf16.vlgmr.msra.gmra.mrb[0].mxu1 %v591_v14 }
  0x2a   :  { %515 = vmatprep.mubr.msk.bf16.mxu0 %vm182_vm0, %v588_v15  ;;  %519 = vmatprep.mubr.msk.bf16.mxu1 %vm182_vm0, %v597_v16 }
  0x31   :  { %248 = vmatmul.mubr.bf16.gmra.mrb[4].mxu0 %v590_v17  ;;  %280 = vmatmul.mubr.bf16.gmra.mrb[4].mxu1 %v599_v18 }
  0x32   :  { %516 = vmatprep.mubr.msk.bf16.mxu0 %vm182_vm0, %v594_v19  ;;  %520 = vmatprep.mubr.msk.bf16.mxu1 %vm182_vm0, %v603_v20 }
  0x39   :  { %256 = vmatmul.mubr.bf16.gmra.mrb[8].mxu0 %v596_v21  ;;  %288 = vmatmul.mubr.bf16.gmra.mrb[8].mxu1 %v605_v22 }
  0x3a   :  { %517 = vmatprep.mubr.msk.bf16.mxu0 %vm182_vm0, %v600_v23  ;;  %521 = vmatprep.mubr.msk.bf16.mxu1 %vm182_vm0, %v606_v24 }
  0x41   :  { %264 = vmatmul.mubr.bf16.gmra.mrb[12].mxu0 %v602_v25  ;;  %296 = vmatmul.mubr.bf16.gmra.mrb[12].mxu1 %v608_v26 }
  0xfc   :  { %v241_v27 = vpop.f32.mrb[0].mxu0  ;;  %v716_v28 = vpop.f32.mrb[0].mxu1 }
  0xfd   :  { %v538_v29 = vpack.c.bf16 %v241_v27, %v241_v27  ;;  %v423_v30 = vmul.f32 %v241_v27, %v241_v27  ;;  %v243_v31 = vpop.f32.mrb[1].mxu0  ;;  %v546_v32 = vpack.c.bf16 %v716_v28, %v716_v28  ;;  %v275_v33 = vpop.f32.mrb[1].mxu1  ;;  %v386_v36 = vsel %vm385_vm2, %v241_v27, 0.0 }
  0xfe   :  { %v244_v34 = vpop.f32.mrb[2].mxu0  ;;  %v720_v35 = vpop.f32.mrb[2].mxu1 }
  0xff   :  { %369 = vst.msk [vmem:[%s859_s2] sm:$0xf] %vm368_vm1, %v538_v29  ;;  %v539_v37 = vpack.c.bf16 %v244_v34, %v244_v34  ;;  %v387_v38 = vsel %vm385_vm2, %v244_v34, 0.0  ;;  %v424_v39 = vmul.f32 %v244_v34, %v244_v34  ;;  %v246_v40 = vpop.f32.mrb[3].mxu0  ;;  %377 = vst.msk [vmem:[%s859_s2 + $0x20] sm:$0xf] %vm368_vm1, %v546_v32  ;;  %v547_v43 = vpack.c.bf16 %v720_v35, %v720_v35 }
 0x100   :  { %v278_v41 = vpop.f32.mrb[3].mxu1  ;;  %v388_v42 = vadd.f32 %v387_v38, %v386_v36  ;;  %v439_v44 = vsel %vm385_vm2, %v423_v30, 0.0 }
 0x101   :  { %370 = vst.msk [vmem:[%s859_s2 + $0x4] sm:$0xf] %vm368_vm1, %v539_v37  ;;  %v440_v45 = vsel %vm385_vm2, %v424_v39, 0.0  ;;  %378 = vst.msk [vmem:[%s859_s2 + $0x24] sm:$0xf] %vm368_vm1, %v547_v43  ;;  %v431_v37 = vmul.f32 %v716_v28, %v716_v28 }
 0x102   :  { %v441_v46 = vadd.f32 %v440_v45, %v439_v44 }
 0x104   :  { %v249_v47 = vpop.f32.mrb[4].mxu0  ;;  %v744_v48 = vpop.f32.mrb[4].mxu1 }
 0x105   :  { %v540_v49 = vpack.c.bf16 %v249_v47, %v249_v47  ;;  %v389_v50 = vsel %vm385_vm2, %v249_v47, 0.0  ;;  %v425_v51 = vmul.f32 %v249_v47, %v249_v47  ;;  %v251_v52 = vpop.f32.mrb[5].mxu0  ;;  %v548_v53 = vpack.c.bf16 %v744_v48, %v744_v48  ;;  %v283_v54 = vpop.f32.mrb[5].mxu1 }
 0x106   :  { %v390_v55 = vadd.f32 %v389_v50, %v388_v42  ;;  %v252_v56 = vpop.f32.mrb[6].mxu0  ;;  %v749_v57 = vpop.f32.mrb[6].mxu1  ;;  %v432_v52 = vmul.f32 %v720_v35, %v720_v35 }
 0x107   :  { %371 = vst.msk [vmem:[%s859_s2 + $0x8] sm:$0xf] %vm368_vm1, %v540_v49  ;;  %v442_v58 = vsel %vm385_vm2, %v425_v51, 0.0  ;;  %v541_v59 = vpack.c.bf16 %v252_v56, %v252_v56  ;;  %v391_v60 = vsel %vm385_vm2, %v252_v56, 0.0  ;;  %v426_v61 = vmul.f32 %v252_v56, %v252_v56  ;;  %v254_v62 = vpop.f32.mrb[7].mxu0  ;;  %v286_v63 = vpop.f32.mrb[7].mxu1 }
 0x108   :  { %379 = vst.msk [vmem:[%s859_s2 + $0x28] sm:$0xf] %vm368_vm1, %v548_v53  ;;  %v443_v0 = vadd.f32 %v442_v58, %v441_v46  ;;  %v392_v1 = vadd.f32 %v391_v60, %v390_v55  ;;  %v549_v2 = vpack.c.bf16 %v749_v57, %v749_v57  ;;  %v401_v51 = vsel %vm385_vm2, %v716_v28, 0.0 }
 0x109   :  { %372 = vst.msk [vmem:[%s859_s2 + $0xc] sm:$0xf] %vm368_vm1, %v541_v59  ;;  %v444_v3 = vsel %vm385_vm2, %v426_v61, 0.0  ;;  %v454_v56 = vsel %vm385_vm2, %v431_v37, 0.0  ;;  %v403_v28 = vsel %vm385_vm2, %v720_v35, 0.0  ;;  %v433_v58 = vmul.f32 %v744_v48, %v744_v48 }
 0x10a   :  { %v445_v4 = vadd.f32 %v444_v3, %v443_v0  ;;  %380 = vst.msk [vmem:[%s859_s2 + $0x2c] sm:$0xf] %vm368_vm1, %v549_v2  ;;  %v456_v61 = vsel %vm385_vm2, %v432_v52, 0.0  ;;  %v405_v62 = vsel %vm385_vm2, %v744_v48, 0.0  ;;  %v434_v63 = vmul.f32 %v749_v57, %v749_v57 }
 0x10b   :  { %v458_v2 = vsel %vm385_vm2, %v433_v58, 0.0  ;;  %v407_v35 = vsel %vm385_vm2, %v749_v57, 0.0 }
 0x10c   :  { %v257_v5 = vpop.f32.mrb[8].mxu0  ;;  %v772_v6 = vpop.f32.mrb[8].mxu1 }
 0x10d   :  { %v542_v7 = vpack.c.bf16 %v257_v5, %v257_v5  ;;  %v393_v8 = vsel %vm385_vm2, %v257_v5, 0.0  ;;  %v427_v9 = vmul.f32 %v257_v5, %v257_v5  ;;  %v259_v10 = vpop.f32.mrb[9].mxu0  ;;  %v550_v11 = vpack.c.bf16 %v772_v6, %v772_v6  ;;  %v291_v12 = vpop.f32.mrb[9].mxu1 }
 0x10e   :  { %v394_v13 = vadd.f32 %v393_v8, %v392_v1  ;;  %v260_v14 = vpop.f32.mrb[10].mxu0  ;;  %v777_v15 = vpop.f32.mrb[10].mxu1  ;;  %v435_v3 = vmul.f32 %v772_v6, %v772_v6  ;;  %v409_v48 = vsel %vm385_vm2, %v772_v6, 0.0 }
 0x10f   :  { %373 = vst.msk [vmem:[%s859_s2 + $0x10] sm:$0xf] %vm368_vm1, %v542_v7  ;;  %v446_v16 = vsel %vm385_vm2, %v427_v9, 0.0  ;;  %v543_v17 = vpack.c.bf16 %v260_v14, %v260_v14  ;;  %v395_v18 = vsel %vm385_vm2, %v260_v14, 0.0  ;;  %v428_v19 = vmul.f32 %v260_v14, %v260_v14  ;;  %v262_v20 = vpop.f32.mrb[11].mxu0  ;;  %v294_v21 = vpop.f32.mrb[11].mxu1 }
 0x110   :  { %381 = vst.msk [vmem:[%s859_s2 + $0x30] sm:$0xf] %vm368_vm1, %v550_v11  ;;  %v447_v22 = vadd.f32 %v446_v16, %v445_v4  ;;  %v396_v23 = vadd.f32 %v395_v18, %v394_v13  ;;  %v551_v24 = vpack.c.bf16 %v777_v15, %v777_v15  ;;  %v460_v7 = vsel %vm385_vm2, %v434_v63, 0.0 }
 0x111   :  { %374 = vst.msk [vmem:[%s859_s2 + $0x14] sm:$0xf] %vm368_vm1, %v543_v17  ;;  %v448_v25 = vsel %vm385_vm2, %v428_v19, 0.0  ;;  %v436_v8 = vmul.f32 %v777_v15, %v777_v15  ;;  %v462_v12 = vsel %vm385_vm2, %v435_v3, 0.0  ;;  %v411_v57 = vsel %vm385_vm2, %v777_v15, 0.0 }
 0x112   :  { %v449_v26 = vadd.f32 %v448_v25, %v447_v22  ;;  %382 = vst.msk [vmem:[%s859_s2 + $0x34] sm:$0xf] %vm368_vm1, %v551_v24 }
 0x113   :  { %v464_v17 = vsel %vm385_vm2, %v436_v8, 0.0 }
 0x114   :  { %v265_v27 = vpop.f32.mrb[12].mxu0  ;;  %v297_v29 = vpop.f32.mrb[12].mxu1 }
 0x115   :  { %v544_v30 = vpack.c.bf16 %v265_v27, %v265_v27  ;;  %v397_v31 = vsel %vm385_vm2, %v265_v27, 0.0  ;;  %v429_v32 = vmul.f32 %v265_v27, %v265_v27  ;;  %v267_v33 = vpop.f32.mrb[13].mxu0  ;;  %v552_v34 = vpack.c.bf16 %v297_v29, %v297_v29  ;;  %v299_v36 = vpop.f32.mrb[13].mxu1 }
 0x116   :  { %v398_v38 = vadd.f32 %v397_v31, %v396_v23  ;;  %v268_v39 = vpop.f32.mrb[14].mxu0  ;;  %v300_v40 = vpop.f32.mrb[14].mxu1  ;;  %v437_v9 = vmul.f32 %v297_v29, %v297_v29  ;;  %v413_v13 = vsel %vm385_vm2, %v297_v29, 0.0 }
 0x117   :  { %375 = vst.msk [vmem:[%s859_s2 + $0x18] sm:$0xf] %vm368_vm1, %v544_v30  ;;  %v450_v41 = vsel %vm385_vm2, %v429_v32, 0.0  ;;  %v545_v42 = vpack.c.bf16 %v268_v39, %v268_v39  ;;  %v399_v43 = vsel %vm385_vm2, %v268_v39, 0.0  ;;  %v430_v44 = vmul.f32 %v268_v39, %v268_v39  ;;  %v270_v45 = vpop.f32.mrb[15].mxu0  ;;  %v302_v46 = vpop.f32.mrb[15].mxu1 }
 0x118   :  { %383 = vst.msk [vmem:[%s859_s2 + $0x38] sm:$0xf] %vm368_vm1, %v552_v34  ;;  %v451_v47 = vadd.f32 %v450_v41, %v449_v26  ;;  %v400_v49 = vadd.f32 %v399_v43, %v398_v38  ;;  %v553_v50 = vpack.c.bf16 %v300_v40, %v300_v40  ;;  %v466_v18 = vsel %vm385_vm2, %v437_v9, 0.0 }
 0x119   :  { %376 = vst.msk [vmem:[%s859_s2 + $0x1c] sm:$0xf] %vm368_vm1, %v545_v42  ;;  %v452_v53 = vsel %vm385_vm2, %v430_v44, 0.0  ;;  %v438_v6 = vmul.f32 %v300_v40, %v300_v40  ;;  %v415_v21 = vsel %vm385_vm2, %v300_v40, 0.0 }
 0x11a   :  { %v402_v54 = vadd.f32 %v401_v51, %v400_v49  ;;  %v453_v55 = vadd.f32 %v452_v53, %v451_v47  ;;  %384 = vst.msk [vmem:[%s859_s2 + $0x3c] sm:$0xf] %vm368_vm1, %v553_v50 }
 0x11b   :  { %v468_v24 = vsel %vm385_vm2, %v438_v6, 0.0 }
 0x11c   :  { %v404_v59 = vadd.f32 %v403_v28, %v402_v54  ;;  %v455_v60 = vadd.f32 %v454_v56, %v453_v55 }
 0x11e   :  { %v457_v0 = vadd.f32 %v456_v61, %v455_v60  ;;  %v406_v1 = vadd.f32 %v405_v62, %v404_v59 }
 0x120   :  { %v408_v4 = vadd.f32 %v407_v35, %v406_v1  ;;  %v459_v5 = vadd.f32 %v458_v2, %v457_v0 }
 0x122   :  { %v410_v10 = vadd.f32 %v409_v48, %v408_v4  ;;  %v461_v11 = vadd.f32 %v460_v7, %v459_v5 }
 0x124   :  { %v463_v14 = vadd.f32 %v462_v12, %v461_v11  ;;  %v412_v16 = vadd.f32 %v411_v57, %v410_v10 }
 0x126   :  { %v465_v19 = vadd.f32 %v464_v17, %v463_v14  ;;  %v414_v20 = vadd.f32 %v413_v13, %v412_v16 }
 0x128   :  { %v467_v22 = vadd.f32 %v466_v18, %v465_v19  ;;  %v416_v23 = vadd.f32 %v415_v21, %v414_v20 }
 0x12a   :  { %v417_v25 = vrot.slane %v416_v23, 4  ;;  %v469_v26 = vadd.f32 %v468_v24, %v467_v22 }
 0x12c   :  { %v418_v15 = vadd.f32 %v417_v25, %v416_v23  ;;  %v470_v27 = vrot.slane %v469_v26, 4 }
 0x12e   :  { %v419_v29 = vrot.slane %v418_v15, 2  ;;  %v471_v30 = vadd.f32 %v470_v27, %v469_v26 }
 0x130   :  { %v420_v31 = vadd.f32 %v419_v29, %v418_v15  ;;  %v472_v32 = vrot.slane %v471_v30, 2 }
 0x132   :  { %v421_v33 = vrot.slane %v420_v31, 1  ;;  %v473_v34 = vadd.f32 %v472_v32, %v471_v30 }
 0x134   :  { %v474_v36 = vrot.slane %v473_v34, 1  ;;  %v422_v37 = vadd.f32 %v421_v33, %v420_v31 }
 0x136   :  { %v475_v38 = vadd.f32 %v474_v36, %v473_v34 }
 0x138   :  { %v477_v39 = vsel %vm476_vm3, %v422_v37, %v475_v38 }
 0x139   :  { %479 = vst.msk [vmem:[%s860_s3] sm:$0x3] %vm478_vm4, %v477_v39 }

</bundles_post_ra>
